<compile_context>
chip_gen: v7x
topology: tpu7x:2x2x1
jax: 0.10.0
libtpu: 0.0.40
codegen_flags: <defaults>
</compile_context>

<pallas_src>
import functools

import jax
import jax.numpy as jnp
from jax.experimental import pallas as pl
from jax.experimental.pallas import tpu as pltpu


def _round_up(x, m):
    return ((x + m - 1) // m) * m


def _resnet_block_kernel(x_ref, w0_ref, b0_ref, w1_ref, b1_ref, *rest,
                         final_nl: bool, has_shortcut: bool):
    if has_shortcut:
        ws_ref, o_ref = rest
    else:
        (o_ref,) = rest

    x = x_ref[...]                                   # compute dtype (bf16/f32)

    # net = fc_0(relu(x))  -- MXU in compute dtype, f32 accumulation.
    h = jnp.maximum(x, 0.0)
    net = jnp.dot(h, w0_ref[...], preferred_element_type=jnp.float32)
    net = net + b0_ref[...]                          # f32 bias add

    # dx = fc_1(relu(net))
    net = jnp.maximum(net, 0.0).astype(w1_ref.dtype)
    dx = jnp.dot(net, w1_ref[...], preferred_element_type=jnp.float32)
    dx = dx + b1_ref[...]

    # shortcut: learned bias-free linear, or identity add (no matmul / no eye).
    if has_shortcut:
        x_s = jnp.dot(x, ws_ref[...], preferred_element_type=jnp.float32)
    else:
        x_s = x.astype(jnp.float32)

    out = x_s + dx
    if final_nl:
        out = jnp.maximum(out, 0.2 * out)            # leaky_relu(slope=0.2)

    o_ref[...] = out.astype(o_ref.dtype)


def prepare_params(params, compute_dtype=jnp.bfloat16):
    """One-time weight prep (hoisted out of the per-call path).

    Pads feature dims to multiples of 128 (lane-dense MXU passes / stores) and
    casts matmul weights to the MXU compute dtype.  Biases stay f32 (they add
    into the f32 accumulator).

    params: transposed-vs-PyTorch weights: w0 (size_in, size_h), b0 (1, size_h),
    w1 (size_h, size_out), b1 (1, size_out), optional ws (size_in, size_out)
    when size_in != size_out.
    """
    w0, b0, w1, b1 = params["w0"], params["b0"], params["w1"], params["b1"]
    ws = params.get("ws", None)
    size_in, size_h = w0.shape
    size_out = w1.shape[1]

    cin_p = _round_up(size_in, 128)
    ch_p = _round_up(size_h, 128)
    cout_p = _round_up(size_out, 128)
    cd = compute_dtype

    return {
        "w0": jnp.pad(w0.astype(cd), ((0, cin_p - size_in), (0, ch_p - size_h))),
        "b0": jnp.pad(b0.astype(jnp.float32), ((0, 0), (0, ch_p - size_h))),
        "w1": jnp.pad(w1.astype(cd), ((0, ch_p - size_h), (0, cout_p - size_out))),
        "b1": jnp.pad(b1.astype(jnp.float32), ((0, 0), (0, cout_p - size_out))),
        "ws": (None if ws is None else
               jnp.pad(ws.astype(cd), ((0, cin_p - size_in), (0, cout_p - size_out)))),
        "size_in": size_in,
        "size_out": size_out,
    }


def resnet_block_fc(x, prepared, *, final_nl=False, tile_m=512,
                    out_dtype=jnp.float32):
    """x: (M, size_in).  prepared: output of prepare_params()."""
    w0, b0, w1, b1 = prepared["w0"], prepared["b0"], prepared["w1"], prepared["b1"]
    ws = prepared["ws"]
    has_shortcut = ws is not None
    size_in, size_out = prepared["size_in"], prepared["size_out"]

    cin_p, ch_p = w0.shape
    cout_p = w1.shape[1]
    compute_dtype = w0.dtype

    M, xin = x.shape
    assert xin == size_in, (xin, size_in)

    # Per-call x prep: feature-dim pad to lane multiple + compute-dtype cast.
    # Rows are NOT padded; the tail row tile relies on Pallas OOB write masking.
    if xin != cin_p:
        x = jnp.pad(x, ((0, 0), (0, cin_p - xin)))
    x = x.astype(compute_dtype)

    # Row tile: sublane-aligned; capped at ~half the rows so grid_m >= 2 when
    # possible (both v7x TensorCores busy on the "parallel" axis).
    tile_m = _round_up(max(tile_m, 8), 8)
    half_rows = _round_up(-(-M // 2), 8)
    tm = max(8, min(tile_m, half_rows))
    grid_m = pl.cdiv(M, tm)

    resident = pl.Buffered(1)   # grid-invariant operands: single-buffered
    in_specs = [
        pl.BlockSpec((tm, cin_p), lambda i: (i, 0)),                           # x tile
        pl.BlockSpec((cin_p, ch_p), lambda i: (0, 0), pipeline_mode=resident),  # W0
        pl.BlockSpec((1, ch_p), lambda i: (0, 0), pipeline_mode=resident),      # b0
        pl.BlockSpec((ch_p, cout_p), lambda i: (0, 0), pipeline_mode=resident), # W1
        pl.BlockSpec((1, cout_p), lambda i: (0, 0), pipeline_mode=resident),    # b1
    ]
    args = [x, w0, b0, w1, b1]
    if has_shortcut:
        in_specs.append(pl.BlockSpec((cin_p, cout_p), lambda i: (0, 0),
                                     pipeline_mode=resident))                   # Ws
        args.append(ws)

    # VMEM budget: single-buffered weights + double-buffered x/out tiles +
    # f32 intermediates (net, relu(net), dx, x_s, out), with 25% headroom.
    c_item = jnp.dtype(compute_dtype).itemsize
    o_item = jnp.dtype(out_dtype).itemsize
    weight_bytes = c_item * (w0.size + w1.size + (ws.size if has_shortcut else 0)) \
        + 4 * (b0.size + b1.size)
    act_bytes = (2 * tm * cin_p * c_item + 2 * tm * cout_p * o_item
                 + 4 * tm * (2 * ch_p + 3 * cout_p))
    vmem_limit = int(min(max((weight_bytes + act_bytes) * 5 // 4, 32 << 20),
                         112 << 20))
    # TODO(synk): if bf16 weights alone exceed ~48 MiB (v7x has 64 MiB VMEM/TC),
    # add a second grid axis over cout (column-tile W1/Ws, keep net in scratch).

    kernel = functools.partial(_resnet_block_kernel,
                               final_nl=final_nl, has_shortcut=has_shortcut)

    out_p = pl.pallas_call(
        kernel,
        out_shape=jax.ShapeDtypeStruct((M, cout_p), out_dtype),
        grid_spec=pltpu.PrefetchScalarGridSpec(
            num_scalar_prefetch=0,
            grid=(grid_m,),
            in_specs=in_specs,
            out_specs=pl.BlockSpec((tm, cout_p), lambda i: (i, 0)),
        ),
        compiler_params=pltpu.CompilerParams(
            dimension_semantics=("parallel",),
            vmem_limit_bytes=vmem_limit),
    )(*args)

    return out_p if cout_p == size_out else out_p[:, :size_out]


def init_params(key, size_in, size_out=None, size_h=None):
    """Deterministic init matching ResnetBlockFC.__init__ shapes/semantics."""
    if size_out is None:
        size_out = size_in
    if size_h is None:
        size_h = min(size_in, size_out)
    k0w, k0b, k1b, ksw = jax.random.split(key, 4)

    # nn.Linear default init: U(-1/sqrt(fan_in), 1/sqrt(fan_in)) for W and b.
    lim0 = 1.0 / (size_in ** 0.5)
    lim1 = 1.0 / (size_h ** 0.5)
    w0 = jax.random.uniform(k0w, (size_in, size_h), jnp.float32, -lim0, lim0)
    b0 = jax.random.uniform(k0b, (1, size_h), jnp.float32, -lim0, lim0)
    # fc_1.weight is zero-initialized in the module; bias keeps default init.
    w1 = jnp.zeros((size_h, size_out), jnp.float32)
    b1 = jax.random.uniform(k1b, (1, size_out), jnp.float32, -lim1, lim1)
    params = {"w0": w0, "b0": b0, "w1": w1, "b1": b1}
    if size_in != size_out:
        params["ws"] = jax.random.uniform(ksw, (size_in, size_out), jnp.float32,
                                          -lim0, lim0)   # bias-free Linear
    return params


def reference_forward(x, params, final_nl=False):
    h = jnp.maximum(x, 0.0)
    net = h @ params["w0"] + params["b0"]
    dx = jnp.maximum(net, 0.0) @ params["w1"] + params["b1"]
    x_s = x @ params["ws"] if "ws" in params else x
    out = x_s + dx
    if final_nl:
        out = jnp.where(out >= 0.0, out, 0.2 * out)
    return out


if __name__ == "__main__":
    key = jax.random.PRNGKey(0)
    kx, kp1, kp2 = jax.random.split(key, 3)

    B, N = 2, 8                      # batch of 2, 8 points each -> M = 16 rows
    size_in, size_out = 32, 64       # size_in != size_out -> learned shortcut

    x = jax.random.normal(kx, (B, N, size_in), jnp.float32)
    x_flat = x.reshape(B * N, size_in)

    # Case 1: projection shortcut + final leaky_relu (bf16 MXU path).
    params = init_params(kp1, size_in, size_out)
    prep = prepare_params(params)                      # one-time weight prep
    out = resnet_block_fc(x_flat, prep, final_nl=True)
    jax.block_until_ready(out)
    ref = reference_forward(x_flat, params, final_nl=True)
    assert out.shape == (B * N, size_out)
    assert jnp.allclose(out, ref, atol=5e-2, rtol=5e-2), "mismatch (shortcut, bf16)"

    # Case 1b: same block on the f32 path (tight check of the fused math).
    prep32 = prepare_params(params, compute_dtype=jnp.float32)
    out32 = resnet_block_fc(x_flat, prep32, final_nl=True)
    jax.block_until_ready(out32)
    assert jnp.allclose(out32, ref, atol=1e-4, rtol=1e-4), "mismatch (shortcut, f32)"

    # Case 2: identity shortcut (size_in == size_out), no final nonlinearity.
    params_id = init_params(kp2, size_in)              # size_out defaults to size_in
    prep_id = prepare_params(params_id)
    out_id = resnet_block_fc(x_flat, prep_id, final_nl=False)
    jax.block_until_ready(out_id)
    ref_id = reference_forward(x_flat, params_id, final_nl=False)
    assert out_id.shape == (B * N, size_in)
    assert jnp.allclose(out_id, ref_id, atol=5e-2, rtol=5e-2), "mismatch (identity)"

    print("KERNEL_OK")
</pallas_src>

<mosaic_0001>
module attributes {stable_mosaic.version = 11 : i64} {
  func.func @_resnet_block_kernel(%arg0: i32, %arg1: memref<8x128xbf16, #tpu.memory_space<vmem>>, %arg2: memref<128x128xbf16, #tpu.memory_space<vmem>>, %arg3: memref<1x128xf32, #tpu.memory_space<vmem>>, %arg4: memref<128x128xbf16, #tpu.memory_space<vmem>>, %arg5: memref<1x128xf32, #tpu.memory_space<vmem>>, %arg6: memref<128x128xbf16, #tpu.memory_space<vmem>>, %arg7: memref<8x128xf32, #tpu.memory_space<vmem>>) attributes {dimension_semantics = [#tpu.dimension_semantics<parallel>], iteration_bounds = array<i64: 2>, scalar_prefetch = 0 : i64, scratch_operands = 0 : i64, tpu.core_type = #tpu.core_type<tc>, window_params = [{transform_indices = @transform_0, window_bounds = array<i64: 8, 128>}, {pipeline_mode = #tpu.pipeline_mode<synchronous>, transform_indices = @transform_1, window_bounds = array<i64: 128, 128>}, {pipeline_mode = #tpu.pipeline_mode<synchronous>, transform_indices = @transform_2, window_bounds = array<i64: 1, 128>}, {pipeline_mode = #tpu.pipeline_mode<synchronous>, transform_indices = @transform_3, window_bounds = array<i64: 128, 128>}, {pipeline_mode = #tpu.pipeline_mode<synchronous>, transform_indices = @transform_4, window_bounds = array<i64: 1, 128>}, {pipeline_mode = #tpu.pipeline_mode<synchronous>, transform_indices = @transform_5, window_bounds = array<i64: 128, 128>}, {transform_indices = @transform_6, window_bounds = array<i64: 8, 128>}]} {
    %c0 = arith.constant 0 : index
    %c0_0 = arith.constant 0 : index
    %0 = vector.load %arg1[%c0, %c0_0] : memref<8x128xbf16, #tpu.memory_space<vmem>>, vector<8x128xbf16>
    %cst = arith.constant 0.000000e+00 : bf16
    %1 = vector.broadcast %cst : bf16 to vector<8x128xbf16>
    %2 = arith.maximumf %0, %1 : vector<8x128xbf16>
    %c0_1 = arith.constant 0 : index
    %c0_2 = arith.constant 0 : index
    %3 = vector.load %arg2[%c0_1, %c0_2] : memref<128x128xbf16, #tpu.memory_space<vmem>>, vector<128x128xbf16>
    %cst_3 = arith.constant dense<0.000000e+00> : vector<8x128xf32>
    %4 = tpu.matmul %2, %3, %cst_3 {dimension_numbers = #tpu.dot_dimension_numbers<[1], [0], [0], [1], [0, 0, 1, 1], [], []>} : vector<8x128xbf16>, vector<128x128xbf16>, vector<8x128xf32> -> vector<8x128xf32>
    %c0_4 = arith.constant 0 : index
    %c0_5 = arith.constant 0 : index
    %5 = vector.load %arg3[%c0_4, %c0_5] : memref<1x128xf32, #tpu.memory_space<vmem>>, vector<1x128xf32>
    %6 = vector.broadcast %5 : vector<1x128xf32> to vector<8x128xf32>
    %7 = arith.addf %4, %6 : vector<8x128xf32>
    %cst_6 = arith.constant 0.000000e+00 : f32
    %8 = vector.broadcast %cst_6 : f32 to vector<8x128xf32>
    %9 = arith.maximumf %7, %8 : vector<8x128xf32>
    %10 = arith.truncf %9 : vector<8x128xf32> to vector<8x128xbf16>
    %c0_7 = arith.constant 0 : index
    %c0_8 = arith.constant 0 : index
    %11 = vector.load %arg4[%c0_7, %c0_8] : memref<128x128xbf16, #tpu.memory_space<vmem>>, vector<128x128xbf16>
    %cst_9 = arith.constant dense<0.000000e+00> : vector<8x128xf32>
    %12 = tpu.matmul %10, %11, %cst_9 {dimension_numbers = #tpu.dot_dimension_numbers<[1], [0], [0], [1], [0, 0, 1, 1], [], []>} : vector<8x128xbf16>, vector<128x128xbf16>, vector<8x128xf32> -> vector<8x128xf32>
    %c0_10 = arith.constant 0 : index
    %c0_11 = arith.constant 0 : index
    %13 = vector.load %arg5[%c0_10, %c0_11] : memref<1x128xf32, #tpu.memory_space<vmem>>, vector<1x128xf32>
    %14 = vector.broadcast %13 : vector<1x128xf32> to vector<8x128xf32>
    %15 = arith.addf %12, %14 : vector<8x128xf32>
    %c0_12 = arith.constant 0 : index
    %c0_13 = arith.constant 0 : index
    %16 = vector.load %arg6[%c0_12, %c0_13] : memref<128x128xbf16, #tpu.memory_space<vmem>>, vector<128x128xbf16>
    %cst_14 = arith.constant dense<0.000000e+00> : vector<8x128xf32>
    %17 = tpu.matmul %0, %16, %cst_14 {dimension_numbers = #tpu.dot_dimension_numbers<[1], [0], [0], [1], [0, 0, 1, 1], [], []>} : vector<8x128xbf16>, vector<128x128xbf16>, vector<8x128xf32> -> vector<8x128xf32>
    %18 = arith.addf %17, %15 : vector<8x128xf32>
    %cst_15 = arith.constant 2.000000e-01 : f32
    %19 = vector.broadcast %cst_15 : f32 to vector<8x128xf32>
    %20 = arith.mulf %19, %18 : vector<8x128xf32>
    %21 = arith.maximumf %18, %20 : vector<8x128xf32>
    %c0_16 = arith.constant 0 : index
    %c0_17 = arith.constant 0 : index
    %22 = vector.load %arg7[%c0_16, %c0_17] : memref<8x128xf32, #tpu.memory_space<vmem>>, vector<8x128xf32>
    tpu.vector_store %arg7[%c0_16, %c0_17], %21 {strides = array<i32>} : memref<8x128xf32, #tpu.memory_space<vmem>>, vector<8x128xf32>,
    return
  }
  func.func @transform_0(%arg0: i32) -> (i32, i32) {
    %c0_i32 = arith.constant 0 : i32
    %c0_i32_0 = arith.constant 0 : i32
    return %arg0, %c0_i32 : i32, i32
  }
  func.func @transform_1(%arg0: i32) -> (i32, i32) {
    %c0_i32 = arith.constant 0 : i32
    %c0_i32_0 = arith.constant 0 : i32
    %c0_i32_1 = arith.constant 0 : i32
    return %c0_i32, %c0_i32_0 : i32, i32
  }
  func.func @transform_2(%arg0: i32) -> (i32, i32) {
    %c0_i32 = arith.constant 0 : i32
    %c0_i32_0 = arith.constant 0 : i32
    %c0_i32_1 = arith.constant 0 : i32
    return %c0_i32, %c0_i32_0 : i32, i32
  }
  func.func @transform_3(%arg0: i32) -> (i32, i32) {
    %c0_i32 = arith.constant 0 : i32
    %c0_i32_0 = arith.constant 0 : i32
    %c0_i32_1 = arith.constant 0 : i32
    return %c0_i32, %c0_i32_0 : i32, i32
  }
  func.func @transform_4(%arg0: i32) -> (i32, i32) {
    %c0_i32 = arith.constant 0 : i32
    %c0_i32_0 = arith.constant 0 : i32
    %c0_i32_1 = arith.constant 0 : i32
    return %c0_i32, %c0_i32_0 : i32, i32
  }
  func.func @transform_5(%arg0: i32) -> (i32, i32) {
    %c0_i32 = arith.constant 0 : i32
    %c0_i32_0 = arith.constant 0 : i32
    %c0_i32_1 = arith.constant 0 : i32
    return %c0_i32, %c0_i32_0 : i32, i32
  }
  func.func @transform_6(%arg0: i32) -> (i32, i32) {
    %c0_i32 = arith.constant 0 : i32
    %c0_i32_0 = arith.constant 0 : i32
    return %arg0, %c0_i32 : i32, i32
  }
}

</mosaic_0001>

<bundles_post_ra>
// kernel: tpu_custom_call.1
= control target key start
LH: loop header
LB: loop body
LE: loop exit
PB: predicated region body
PF: predicated region fallthrough
CT: control target
= control target key end

     0   :  { %11 = vsyncpa [#allocation3], 0  ;;  %s1538_s0 = inlined_call_operand.hbm [shape: bf16[16,128], index: 0, kind: input, shape index: {}]   ;;  %s1539_s1 = inlined_call_operand.hbm [shape: bf16[128,128], index: 1, kind: input, shape index: {}]   ;;  %s1540_s2 = inlined_call_operand.vmem [shape: f32[1,128], index: 2, kind: input, shape index: {}]   ;;  %s1541_s3 = inlined_call_operand.hbm [shape: bf16[128,128], index: 3, kind: input, shape index: {}]   ;;  %s1542_s4 = inlined_call_operand.vmem [shape: f32[1,128], index: 4, kind: input, shape index: {}]   ;;  %s1543_s5 = inlined_call_operand.hbm [shape: bf16[128,128], index: 5, kind: input, shape index: {}]   ;;  %s1544_s6 = inlined_call_operand.hbm [shape: f32[16,128], index: 6, kind: output, shape index: {}]  }
   0x1   :  { %13 = vsyncpa [#allocation3 + $0x1], 0 }
   0x2   :  { %14 = vsyncpa [#allocation6], 0 }
   0x3   :  { %15 = vsyncpa [#allocation9], 0 }
   0x4   :  { %16 = vsyncpa [#allocation4], 0 }
   0x5   :  { %18 = vsyncpa [#allocation4 + $0x1], 0  ;;  %s1235_s21 = smov 0   ;;  %s1237_s22 = smov 0  }
   0x6   :  { %s1239_s23 = smov 0   ;;  %s1241_s24 = smov 0  }
   0x7 LB: > { %s1256_s25 = sadd.s32 4294967295, %s1188_s24   ;;  %s758_s26 = sadd.s32 4294967294, %s1188_s24   ;;  %s1188_s24 = sphi %s1241_s24, %s1567_s24   ;;  %s1184_s23 = sphi %s1239_s23, %s1566_s23   ;;  %s1180_s22 = sphi %s1237_s22, %s1565_s22   ;;  %s1176_s21 = sphi %s1235_s21, %s1564_s21  }
   0x8   : > { %p44_p0 = scmp.ne.s32.totalorder %s1180_s22, %s1176_s21  ;;  %p1545_p1 = scmp.eq.s32.totalorder %s1256_s25, 0 }
   0x9   : > { %p179_p3 = scmp.eq.s32.totalorder %s758_s26, 1  ;;  %p759_p5 = scmp.ge.s32.totalorder %s1188_s24, 1 }
   0xa   : > { %p1265_p4 = por %p1545_p1, %p44_p0  ;;  %p186_p7 = scmp.lt.s32.totalorder %s1188_s24, 3 }
   0xb   : > { %p1270_p6 = por %p179_p3, %p44_p0  ;;  %s1190_s30 = smov [#allocation5]  }
   0xc   : > { %s1548_s27 = scalar_select %p1265_p4, 1, 0 }
   0xd   : > { %s1549_s28 = scalar_select %p1270_p6, 1, 0 }
   0xe   : > { %p1275_p8 = pnand %p759_p5, %p186_p7  ;;  %s198_s7 = sshll.u32 %s1190_s30, 4  ;;  %s1279_s7 = int_to_ptr.vmem [resolvable:$true] %s198_s7 }
   0xf   : > { %s1191_s9 = smov [#allocation7]   ;;  %s1192_s11 = smov [#allocation8]  }
  0x10   : > { %s1550_s29 = scalar_select %p1275_p8, 1, 0 }
  0x11   : > { %p910_p9 = pneg %p1275_p8  ;;  %s214_s10 = sshll.u32 %s1191_s9, 4  ;;  %s1290_s10 = int_to_ptr.vmem [resolvable:$true] %s214_s10 }
  0x12   : > { %s1292_s12 = sshll.u32 %s1192_s11, 4  ;;  %s1000_s15 = scalar_lea.hbm %s1539_s1, 1024  ;;  %s231_s12 = int_to_ptr.vmem [resolvable:$true] %s1292_s12 }
  0x13   : > { %p1286_p11 = pnand %p910_p9, %p1545_p1  ;;  %p1001_p12 = scmp.ne.s32.totalorder %s1539_s1, %s1000_s15 }
  0x14   : > { %p1007_p5 = scmp.lt.u32.totalorder %s1000_s15, %s1539_s1 }
  0x15   : > { %p1302_p13 = pneg %p1286_p11 }
  0x17   : > { %p1003_p0 = pnand %p1302_p13, %p1001_p12 }
  0x19   : > { %p1004_p3 = pneg %p1003_p0 }
  0x1b   : > { %p1009_p7 = pnand %p1007_p5, %p1004_p3 }
  0x1d   : > { %1012 = shalt.err (!%p1009_p7)
}
  0x1e   : > { %s1013_s26 = scalar_lea.vmem %s1279_s7, 1024  ;;  %p1021_p2 = scmp.lt.s32.totalorder %s1279_s7, %s1279_s7 }
  0x1f   : > { %p1014_p9 = scmp.ne.s32.totalorder %s1279_s7, %s1013_s26  ;;  %p1022_p6 = scmp.lt.s32.totalorder %s1013_s26, %s1013_s26 }
  0x21   : > { %p1016_p10 = pnand %p1014_p9, %p1302_p13  ;;  %p1023_p12 = por %p1022_p6, %p1021_p2 }
  0x23   : > { %p1017_p1 = pneg %p1016_p10 }
  0x25   : > { %p1024_p0 = pnand %p1023_p12, %p1017_p1 }
  0x27   : > { %1027 = shalt.err (!%p1024_p0)
}
  0x28   : > { %s1193_s30 = smov 64   ;;  %s1194_s9 = smov 4  }
  0x29   : > { %913 = dma.hbm_to_vmem [thread:$0]  (!%p1286_p11), %s1539_s1, 1024, %s1279_s7, [#allocation6], %s1193_s30, %s1193_s30, %s1194_s9  }
  0x2a   : > { %s1028_s16 = scalar_lea.hbm %s1541_s3, 1024 }
  0x2b   : > { %p1029_p1 = scmp.ne.s32.totalorder %s1541_s3, %s1028_s16  ;;  %p1035_p10 = scmp.lt.u32.totalorder %s1028_s16, %s1541_s3 }
  0x2d   : > { %p1031_p2 = pnand %p1029_p1, %p1302_p13 }
  0x2f   : > { %p1032_p6 = pneg %p1031_p2 }
  0x31   : > { %p1037_p3 = pnand %p1035_p10, %p1032_p6 }
  0x33   : > { %1040 = shalt.err (!%p1037_p3)
}
  0x34   : > { %s1041_s7 = scalar_lea.vmem %s1290_s10, 1024  ;;  %p1049_p12 = scmp.lt.s32.totalorder %s1290_s10, %s1290_s10 }
  0x35   : > { %p1042_p5 = scmp.ne.s32.totalorder %s1290_s10, %s1041_s7  ;;  %p1050_p0 = scmp.lt.s32.totalorder %s1041_s7, %s1041_s7 }
  0x37   : > { %p1044_p7 = pnand %p1042_p5, %p1302_p13  ;;  %p1051_p1 = por %p1050_p0, %p1049_p12 }
  0x39   : > { %p1045_p9 = pneg %p1044_p7 }
  0x3b   : > { %p1052_p2 = pnand %p1051_p1, %p1045_p9 }
  0x3d   : > { %1055 = shalt.err (!%p1052_p2)
}
  0x3e   : > { %916 = dma.hbm_to_vmem [thread:$0]  (!%p1286_p11), %s1541_s3, 1024, %s1290_s10, [#allocation6], %s1193_s30, %s1193_s30, %s1194_s9  }
  0x3f   : > { %s1056_s16 = scalar_lea.hbm %s1543_s5, 1024 }
  0x40   : > { %p1057_p6 = scmp.ne.s32.totalorder %s1543_s5, %s1056_s16  ;;  %p1063_p5 = scmp.lt.u32.totalorder %s1056_s16, %s1543_s5 }
  0x42   : > { %p1059_p10 = pnand %p1057_p6, %p1302_p13 }
  0x44   : > { %p1060_p3 = pneg %p1059_p10 }
  0x46   : > { %p1065_p7 = pnand %p1063_p5, %p1060_p3 }
  0x48   : > { %1068 = shalt.err (!%p1065_p7)
}
  0x49   : > { %s1069_s7 = scalar_lea.vmem %s231_s12, 1024  ;;  %p1077_p1 = scmp.lt.s32.totalorder %s231_s12, %s231_s12 }
  0x4a   : > { %p1070_p9 = scmp.ne.s32.totalorder %s231_s12, %s1069_s7  ;;  %p1078_p2 = scmp.lt.s32.totalorder %s1069_s7, %s1069_s7 }
  0x4c   : > { %p1072_p12 = pnand %p1070_p9, %p1302_p13  ;;  %p1079_p4 = por %p1078_p2, %p1077_p1 }
  0x4e   : > { %p1073_p0 = pneg %p1072_p12 }
  0x50   : > { %p1080_p8 = pnand %p1079_p4, %p1073_p0 }
  0x52   : > { %1083 = shalt.err (!%p1080_p8)
}
  0x53   : > { %919 = dma.hbm_to_vmem [thread:$0]  (!%p1286_p11), %s1543_s5, 1024, %s231_s12, [#allocation9], %s1193_s30, %s1193_s30, %s1194_s9  }
  0x54   : > { %s1375_s18 = sadd.s32 1, %s1188_s24   ;;  %s31_s13 = sadd.s32 1, %s1184_s23 }
  0x55   : > { %s28_s8 = ssub.s32 %s1188_s24, %s1375_s18  ;;  %p38_p8 = scmp.ne.s32.totalorder %s1184_s23, %s1180_s22 }
  0x56   : > { %p29_p4 = scmp.eq.s32.totalorder %s28_s8, 0  ;;  %p39_p13 = scmp.eq.s32.totalorder %s1188_s24, 0 }
  0x57   : > { %p931_p6 = scmp.lt.s32.totalorder %s1188_s24, 2  ;;  %p1553_p3 = scmp.eq.s32.totalorder %s1256_s25, 1 }
  0x58   : > { %s1385_s14 = scalar_select %p29_p4, %s1184_s23, %s31_s13  }
  0x59   : > { %p40_p10 = por %p39_p13, %p38_p8  ;;  %p1389_p5 = por %p1553_p3, %p38_p8 }
  0x5a   : > { %s244_s16 = sand.u32 1, %s1184_s23   ;;  %s765_s17 = sshll.u32 %s1188_s24, 6 }
  0x5b   : > { %s764_s12 = sshll.u32 %s244_s16, 2  ;;  %s1398_s19 = scalar_lea.hbm %s1538_s0, %s765_s17 }
  0x5c   : > { %s248_s20 = scalar_lea.vmem [#allocation2], %s764_s12  ;;  %p1400_p11 = pnand %p931_p6, %p40_p10 }
  0x5d   : > { %s255_s26 = sshll.u32 %s248_s20, 4  ;;  %s245_s10 = scalar_lea.sflag [#allocation3], %s244_s16  ;;  %s1404_s26 = int_to_ptr.vmem [resolvable:$true] %s255_s26 }
  0x5e   : > { %s1084_s11 = scalar_lea.hbm %s1398_s19, 64  ;;  %p1086_p9 = pneg %p1400_p11 }
  0x5f   : > { %p1085_p7 = scmp.ne.s32.totalorder %s1398_s19, %s1084_s11  ;;  %s1089_s17 = scalar_lea.hbm %s1538_s0, 128 }
  0x60   : > { %p1090_p1 = scmp.lt.u32.totalorder %s1398_s19, %s1538_s0  ;;  %p1091_p2 = scmp.lt.u32.totalorder %s1089_s17, %s1084_s11 }
  0x61   : > { %p1087_p12 = pnand %p1086_p9, %p1085_p7  ;;  %p1093_p8 = scmp.lt.u32.totalorder %s1084_s11, %s1398_s19 }
  0x62   : > { %p1092_p4 = por %p1091_p2, %p1090_p1 }
  0x63   : > { %p1088_p0 = pneg %p1087_p12 }
  0x64   : > { %p1094_p13 = por %p1093_p8, %p1092_p4 }
  0x66   : > { %p1095_p6 = pnand %p1094_p13, %p1088_p0 }
  0x68   : > { %1098 = shalt.err (!%p1095_p6)
}
  0x69   : > { %s1099_s16 = scalar_lea.vmem %s1404_s26, 64  ;;  %s1195_s9 = smov [#allocation2]  }
  0x6a   : > { %p1100_p10 = scmp.ne.s32.totalorder %s1404_s26, %s1099_s16  ;;  %s1104_s20 = sshll.u32 %s1195_s9, 4  ;;  %s1105_s20 = int_to_ptr.vmem [resolvable:$false] %s1104_s20 }
  0x6b   : > { %s1106_s8 = scalar_lea.vmem %s1105_s20, 128  ;;  %p1107_p12 = scmp.lt.s32.totalorder %s1404_s26, %s1105_s20 }
  0x6c   : > { %p1102_p3 = pnand %p1100_p10, %p1086_p9  ;;  %p1108_p1 = scmp.lt.s32.totalorder %s1106_s8, %s1099_s16 }
  0x6e   : > { %p1103_p7 = pneg %p1102_p3  ;;  %p1109_p2 = por %p1108_p1, %p1107_p12 }
  0x70   : > { %p1110_p4 = pnand %p1109_p2, %p1103_p7 }
  0x72   : > { %1113 = shalt.err (!%p1110_p4)
}
  0x73   : > { %923 = dma.hbm_to_vmem [thread:$0]  (!%p1400_p11), %s1398_s19, 64, %s1404_s26, %s245_s10  }
  0x74   : > { %p1556_p0 = scmp.ne.s32.totalorder %s1550_s29, 0 }
  0x75   : > { %s1434_s11 = sand.u32 (!%p1556_p0), 1, %s1180_s22   ;;  %p1557_p9 = scmp.ne.s32.totalorder (!%p1556_p0), %s1548_s27, 0 }
  0x76   : > { %264 = sbr.rel (%p1556_p0) target bundleno = 649 (0x289), region = 44  ;;  %s767_s13 = sshll.u32 (!%p1556_p0), %s1434_s11, 2 }
  0x77   : > { %s267_s17 = scalar_lea.sflag (!%p1556_p0), [#allocation3], %s1434_s11  ;;  %s1438_s12 = scalar_lea.vmem (!%p1556_p0), [#allocation2], %s767_s13 }
  0x7d   : > { %1159 = dma.done.wait (%p1557_p9), %s267_s17, 64  }
  0x7e   : > { %1161 = vsyncadd (%p1557_p9), %s267_s17, 4294967232  ;;  %p1558_p11 = scmp.eq.s32.totalorder %s1256_s25, 0 }
  0x80   : > { %1163 = dma.done.wait (%p1558_p11), [#allocation6], 2048   ;;  %p1559_p8 = pmov %p1558_p11 }
  0x82   : > { %1165 = vsyncadd (%p1559_p8), [#allocation6], 4294965248  ;;  %p1560_p13 = pmov %p1559_p8 }
  0x83   : > { %p1561_p6 = pmov %p1559_p8 }
  0x84   : > { %1167 = dma.done.wait (%p1560_p13), [#allocation9], 1024  }
  0x85   : > { %1169 = vsyncadd (%p1561_p6), [#allocation9], 4294966272  ;;  %v1196_v0 = vmov 0.0   ;;  %vm1197_vm0 = vmmov 0   ;;  %v976_v1 = vld [vmem:[#allocation5] sm:$0xff]   ;;  %v977_v2 = vld [vmem:[#allocation5 + $0x8] sm:$0xff]  }
  0x86   : > { %829 = vmatprep.subr.bf16.mxu0 %v1196_v0  ;;  %845 = vmatprep.mubr.msk.bf16.mxu0 %vm1197_vm0, %v1196_v0  ;;  %v978_v3 = vld [vmem:[#allocation5 + $0x10] sm:$0xff]   ;;  %v984_v4 = vld [vmem:[#allocation7] sm:$0xff]   ;;  %v979_v5 = vld [vmem:[#allocation5 + $0x18] sm:$0xff]   ;;  %v1198_v16 = vmov 0   ;;  %s771_s19 = sshll.u32 %s1434_s11, 3  ;;  %s799_s10 = sshll.u32 %s1256_s25, 7 }
  0x87   : > { %849 = vmatprep.subr.bf16.mxu1 %v1196_v0  ;;  %865 = vmatprep.mubr.msk.bf16.mxu1 %vm1197_vm0, %v1196_v0  ;;  %v985_v6 = vld [vmem:[#allocation7 + $0x8] sm:$0xff]   ;;  %v980_v7 = vld [vmem:[#allocation5 + $0x20] sm:$0xff]   ;;  %v986_v8 = vld [vmem:[#allocation7 + $0x10] sm:$0xff]   ;;  %s310_s30 = scalar_lea.vmem [#allocation10], %s771_s19  ;;  %s1494_s8 = scalar_lea.hbm %s1544_s6, %s799_s10 }
  0x88   : > { %830 = vmatpush3.bf16.msra.mxu0 %v976_v1  ;;  %850 = vmatpush3.bf16.msra.mxu1 %v984_v4  ;;  %v981_v9 = vld [vmem:[#allocation5 + $0x28] sm:$0xff]   ;;  %v987_v10 = vld [vmem:[#allocation7 + $0x18] sm:$0xff]   ;;  %v982_v11 = vld [vmem:[#allocation5 + $0x30] sm:$0xff]   ;;  %s659_s16 = sshll.u32 %s310_s30, 4  ;;  %s646_s13 = scalar_lea.sflag [#allocation4], %s1434_s11  ;;  %s1496_s16 = int_to_ptr.vmem [resolvable:$true] %s659_s16 }
  0x89   : > { %831 = vmatprep.subr.bf16.mxu0 %v1196_v0  ;;  %851 = vmatprep.subr.bf16.mxu1 %v1196_v0  ;;  %v988_v12 = vld [vmem:[#allocation7 + $0x20] sm:$0xff]   ;;  %v983_v13 = vld [vmem:[#allocation5 + $0x38] sm:$0xff]   ;;  %v989_v15 = vld [vmem:[#allocation7 + $0x28] sm:$0xff]   ;;  %s1114_s17 = scalar_lea.vmem %s1496_s16, 128  ;;  %s1199_s25 = smov [#allocation10]  }
  0x8a   : > { %v312_v14 = vld [vmem:[%s1438_s12] sm:$0xf]  ;;  %v990_v18 = vld [vmem:[#allocation7 + $0x30] sm:$0xff]   ;;  %v992_v27 = vld [vmem:[#allocation8] sm:$0xff]   ;;  %p1115_p10 = scmp.ne.s32.totalorder %s1496_s16, %s1114_s17  ;;  %s1118_s12 = sshll.u32 %s1199_s25, 4  ;;  %s1119_s12 = int_to_ptr.vmem [resolvable:$false] %s1118_s12 }
  0x8b   : > { %v313_v17 = vmax.bf16 %v1198_v16, %v312_v14  ;;  %v991_v19 = vld [vmem:[#allocation7 + $0x38] sm:$0xff]   ;;  %v993_v29 = vld [vmem:[#allocation8 + $0x8] sm:$0xff]   ;;  %v994_v30 = vld [vmem:[#allocation8 + $0x10] sm:$0xff]   ;;  %s1120_s27 = scalar_lea.vmem %s1119_s12, 256  ;;  %p1121_p12 = scmp.lt.s32.totalorder %s1496_s16, %s1119_s12 }
  0x8c   : > { %832 = vmatpush3.bf16.msra.mxu0 %v977_v2  ;;  %852 = vmatpush3.bf16.msra.mxu1 %v985_v6  ;;  %v772_v20 = vld [vmem:[%s1540_s2] ss:$0 sm:$0xff]  ;;  %v996_v32 = vld [vmem:[#allocation8 + $0x20] sm:$0xff]   ;;  %v997_v33 = vld [vmem:[#allocation8 + $0x28] sm:$0xff]   ;;  %p1116_p3 = pnand %p1115_p10, %p1389_p5  ;;  %p1122_p1 = scmp.lt.s32.totalorder %s1120_s27, %s1114_s17 }
  0x8d   : > { %833 = vmatprep.subr.bf16.mxu0 %v1196_v0  ;;  %853 = vmatprep.subr.bf16.mxu1 %v1196_v0  ;;  %v995_v31 = vld [vmem:[#allocation8 + $0x18] sm:$0xff]   ;;  %v998_v34 = vld [vmem:[#allocation8 + $0x30] sm:$0xff]  }
  0x8e   : > { %v999_v35 = vld [vmem:[#allocation8 + $0x38] sm:$0xff]   ;;  %p1117_p7 = pneg %p1116_p3  ;;  %p1123_p2 = por %p1122_p1, %p1121_p12 }
  0x8f   : > { %v781_v36 = vld [vmem:[%s1542_s4] ss:$0 sm:$0xff] }
  0x90   : > { %834 = vmatpush3.bf16.msra.mxu0 %v978_v3  ;;  %854 = vmatpush3.bf16.msra.mxu1 %v986_v8  ;;  %p1124_p4 = pnand %p1123_p2, %p1117_p7 }
  0x91   : > { %835 = vmatprep.subr.bf16.mxu0 %v1196_v0  ;;  %855 = vmatprep.subr.bf16.mxu1 %v1196_v0 }
  0x94   : > { %836 = vmatpush3.bf16.msra.mxu0 %v979_v5  ;;  %856 = vmatpush3.bf16.msra.mxu1 %v987_v10 }
  0x95   : > { %837 = vmatprep.subr.bf16.mxu0 %v1196_v0  ;;  %857 = vmatprep.subr.bf16.mxu1 %v1196_v0 }
  0x98   : > { %838 = vmatpush3.bf16.msra.mxu0 %v980_v7  ;;  %858 = vmatpush3.bf16.msra.mxu1 %v988_v12 }
  0x99   : > { %839 = vmatprep.subr.bf16.mxu0 %v1196_v0  ;;  %859 = vmatprep.subr.bf16.mxu1 %v1196_v0 }
  0x9c   : > { %840 = vmatpush3.bf16.msra.mxu0 %v981_v9  ;;  %860 = vmatpush3.bf16.msra.mxu1 %v989_v15 }
  0x9d   : > { %841 = vmatprep.subr.bf16.mxu0 %v1196_v0  ;;  %861 = vmatprep.subr.bf16.mxu1 %v1196_v0 }
  0xa0   : > { %842 = vmatpush3.bf16.msra.mxu0 %v982_v11  ;;  %862 = vmatpush3.bf16.msra.mxu1 %v990_v18 }
  0xa1   : > { %843 = vmatprep.subr.bf16.mxu0 %v1196_v0  ;;  %863 = vmatprep.subr.bf16.mxu1 %v1196_v0 }
  0xa4   : > { %844 = vmatpush3.bf16.msra.mxu0 %v983_v13  ;;  %864 = vmatpush3.bf16.msra.mxu1 %v991_v19 }
  0xa5   : > { %869 = vmatprep.subr.bf16.mxu1 %v1196_v0 }
  0xa7   : > { %846 = vmatmul.mubr.bf16.vlgmr.msra.gmra.mrb[0].mxu0 %v313_v17 }
 0x17a   : > { %v419_v21 = vpop.f32.mrb[0].mxu0 }
 0x17b   : > { %v420_v22 = vadd.f32 %v772_v20, %v419_v21  ;;  %v847_v23 = vpop.f32.mrb[1].mxu0 }
 0x17c   : > { %v422_v24 = vpop.f32.mrb[2].mxu0 }
 0x17d   : > { %v425_v25 = vmax.f32 %v420_v22, 0.0  ;;  %v848_v26 = vpop.f32.mrb[3].mxu0 }
 0x17f   : > { %v426_v28 = vpack.c.bf16 %v425_v25, %v425_v25 }
 0x181   : > { %866 = vmatmul.mubr.bf16.vlgmr.msra.gmra.mrb[0].mxu1 %v426_v28 }
 0x182   : > { %870 = vmatpush3.bf16.msra.mxu1 %v992_v27  ;;  %885 = vmatprep.mubr.msk.bf16.mxu1 %vm1197_vm0, %v1196_v0 }
 0x183   : > { %871 = vmatprep.subr.bf16.mxu1 %v1196_v0 }
 0x186   : > { %872 = vmatpush3.bf16.msra.mxu1 %v993_v29 }
 0x187   : > { %873 = vmatprep.subr.bf16.mxu1 %v1196_v0 }
 0x18a   : > { %874 = vmatpush3.bf16.msra.mxu1 %v994_v30 }
 0x18b   : > { %875 = vmatprep.subr.bf16.mxu1 %v1196_v0 }
 0x18e   : > { %876 = vmatpush3.bf16.msra.mxu1 %v995_v31 }
 0x18f   : > { %877 = vmatprep.subr.bf16.mxu1 %v1196_v0 }
 0x192   : > { %878 = vmatpush3.bf16.msra.mxu1 %v996_v32 }
 0x193   : > { %879 = vmatprep.subr.bf16.mxu1 %v1196_v0 }
 0x196   : > { %880 = vmatpush3.bf16.msra.mxu1 %v997_v33 }
 0x197   : > { %881 = vmatprep.subr.bf16.mxu1 %v1196_v0 }
 0x19a   : > { %882 = vmatpush3.bf16.msra.mxu1 %v998_v34 }
 0x19b   : > { %883 = vmatprep.subr.bf16.mxu1 %v1196_v0 }
 0x19e   : > { %884 = vmatpush3.bf16.msra.mxu1 %v999_v35 }
 0x1a1   : > { %886 = vmatmul.mubr.bf16.vlgmr.msra.gmra.mrb[0].mxu1 %v312_v14 }
 0x274   : > { %v636_v37 = vpop.f32.mrb[0].mxu1 }
 0x275   : > { %v889_v38 = vadd.f32 %v781_v36, %v636_v37  ;;  %v887_v39 = vpop.f32.mrb[1].mxu1 }
 0x276   : > { %v639_v40 = vpop.f32.mrb[2].mxu1 }
 0x277   : > { %v642_v41 = vmul.f32 0.2, %v889_v38  ;;  %v888_v42 = vpop.f32.mrb[3].mxu1 }
 0x279   : > { %v643_v43 = vmax.f32 %v889_v38, %v642_v41 }
 0x27b   : > { %644 = vst [vmem:[%s310_s30] sm:$0xff] %v643_v43 }
 0x27c   : > { %1127 = shalt.err (!%p1124_p4)
}
 0x27d   : > { %s1128_s11 = scalar_lea.hbm %s1494_s8, 128  ;;  %s1132_s26 = scalar_lea.hbm %s1544_s6, 256 }
 0x27e   : > { %p1129_p0 = scmp.ne.s32.totalorder %s1494_s8, %s1128_s11  ;;  %p1133_p8 = scmp.lt.u32.totalorder %s1494_s8, %s1544_s6 }
 0x27f   : > { %p1134_p13 = scmp.lt.u32.totalorder %s1132_s26, %s1128_s11  ;;  %p1136_p10 = scmp.lt.u32.totalorder %s1128_s11, %s1494_s8 }
 0x280   : > { %p1130_p9 = pnand %p1129_p0, %p1389_p5 }
 0x281   : > { %p1135_p6 = por %p1134_p13, %p1133_p8 }
 0x282   : > { %p1131_p11 = pneg %p1130_p9 }
 0x283   : > { %p1137_p3 = por %p1136_p10, %p1135_p6 }
 0x285   : > { %p1138_p7 = pnand %p1137_p3, %p1131_p11 }
 0x287   : > { %1141 = shalt.err (!%p1138_p7)
}
 0x288   : > { %908 = dma.vmem_to_hbm [thread:$0]  (%p1389_p5), %s1496_s16, 128, %s1494_s8, %s646_s13  }
 0x289 PF: > { %s671_s30 = sand.u32 1, %s1176_s21   ;;  %p1562_p12 = scmp.ne.s32.totalorder %s1549_s28, 0 }
 0x28a   : > { %p1563_p1 = scmp.ge.s32.totalorder %s1188_s24, 2  ;;  %s672_s9 = scalar_lea.sflag [#allocation4], %s671_s30 }
 0x28c   : > { %p925_p2 = pnand %p1563_p1, %p1562_p12 }
 0x28e   : > { %1171 = dma.done.wait (!%p925_p2), %s672_s9, 128  }
 0x28f   : > { %1173 = vsyncadd (!%p925_p2), %s672_s9, 4294967168  ;;  %p21_p4 = scmp.ge.s32.totalorder %s1375_s18, 4   ;;  %s1564_s21 = smov %s1180_s22 }
 0x290   : > { %s1565_s22 = smov %s1184_s23  ;;  %s1566_s23 = smov %s1385_s14 }
 0x291   : > { %s1567_s24 = smov %s1375_s18  ;;  %23 = sbr.rel (!%p21_p4) target bundleno = 7 (0x7), region = 101 }
 0x298   :  { %677 = vsyncpa [#allocation3], 1 }
 0x299   :  { %679 = vsyncpa [#allocation3 + $0x1], 1 }
 0x29a   :  { %680 = vsyncpa [#allocation6], 1 }
 0x29b   :  { %681 = vsyncpa [#allocation9], 1 }
 0x29c   :  { %682 = vsyncpa [#allocation4], 1 }
 0x29d   :  { %684 = vsyncpa [#allocation4 + $0x1], 1 }

</bundles_post_ra>
